<compile_context>
chip_gen: v7x
topology: tpu7x:2x2x1
jax: 0.10.0
libtpu: 0.0.40
codegen_flags: <defaults>
</compile_context>

<pallas_src>
import jax
import jax.numpy as jnp
from jax.experimental import pallas as pl
from jax.experimental.pallas import tpu as pltpu


def _h_swish_kernel(x_ref, o_ref):
    x = x_ref[...]
    # relu6(x + 3) / 6  ->  clamp(x + 3, 0, 6) * (1/6)
    hs = jnp.clip(x + 3.0, 0.0, 6.0) * (1.0 / 6.0)
    o_ref[...] = (x * hs).astype(o_ref.dtype)


def _h_swish_jnp(x: jax.Array) -> jax.Array:
    return x * jnp.clip(x + 3.0, 0.0, 6.0) * (1.0 / 6.0)


def _round_up(a: int, m: int) -> int:
    return ((a + m - 1) // m) * m


def h_swish(
    x: jax.Array,
    *,
    target_block_bytes: int = 4 * 1024 * 1024,
    min_pallas_bytes: int = 512 * 1024,
) -> jax.Array:
    """Hard-swish, elementwise. Accepts any shape (e.g. NCHW), float dtypes."""
    orig_shape = x.shape
    dtype = x.dtype
    n = x.size

    # TODO(synk): integer dtypes have no meaningful hardswish; fall back to jnp.
    if n == 0 or not jnp.issubdtype(dtype, jnp.floating):
        return _h_swish_jnp(x)

    itemsize = jnp.dtype(dtype).itemsize
    nbytes = n * itemsize

    # Tiny activations: launch overhead dominates, let XLA fuse the elementwise op.
    if nbytes < min_pallas_bytes:
        return _h_swish_jnp(x)

    flat = x.reshape(-1)

    # Split into a 128-aligned prefix (Pallas) and a <128-element tail (plain jnp).
    n_main = (n // 128) * 128
    tail = n - n_main
    if n_main == 0:
        return _h_swish_jnp(x)
    main = flat[:n_main] if tail else flat

    # Widest lane-dense last dim (any multiple of 128, up to 4096) dividing n_main.
    W = 128
    for k in range(32, 0, -1):  # 4096, 3968, ..., 128
        cand = k * 128
        if n_main % cand == 0:
            W = cand
            break
    rows = n_main // W
    x2d = main.reshape(rows, W)

    # Sublane packing multiple for the row (second-minor) dim.
    sub = {4: 8, 2: 16, 1: 32}.get(itemsize, 8)

    # Row tile sized to ~target_block_bytes, rounded down to a sublane multiple.
    tr_target = max(sub, (target_block_bytes // (W * itemsize)) // sub * sub)

    if rows > tr_target:
        tr = tr_target
    else:
        # Small/medium arrays: still split so (a) both v7x TensorCores get work and
        # (b) >=2 blocks per core allow input-DMA / compute / store overlap.
        if nbytes >= 2 * 1024 * 1024 and rows >= 4 * sub:
            tr = _round_up(pl.cdiv(rows, 4), sub)
        elif rows >= 2 * sub:
            tr = _round_up(pl.cdiv(rows, 2), sub)
        else:
            tr = rows  # single full-extent block (always a legal block shape)
    grid = (pl.cdiv(rows, tr),)  # last block may be partial; Pallas masks it

    # 2 buffers x (in + out) x block, plus headroom. Safe on v5e/v6e/v7x.
    block_bytes = tr * W * itemsize
    vmem_limit = min(48 * 1024 * 1024, 4 * block_bytes + 4 * 1024 * 1024)

    out2d = pl.pallas_call(
        _h_swish_kernel,
        out_shape=jax.ShapeDtypeStruct((rows, W), dtype),
        grid_spec=pltpu.PrefetchScalarGridSpec(
            num_scalar_prefetch=0,
            grid=grid,
            in_specs=[pl.BlockSpec((tr, W), lambda i: (i, 0))],
            out_specs=pl.BlockSpec((tr, W), lambda i: (i, 0)),
        ),
        compiler_params=pltpu.CompilerParams(
            dimension_semantics=("parallel",),
            vmem_limit_bytes=vmem_limit,
        ),
        cost_estimate=pl.CostEstimate(
            flops=4 * n_main,
            transcendentals=0,
            bytes_accessed=2 * n_main * itemsize,
        ),
    )(x2d)

    out_flat = out2d.reshape(-1)
    if tail:
        out_flat = jnp.concatenate([out_flat, _h_swish_jnp(flat[n_main:])])
    return out_flat.reshape(orig_shape)


def h_swish_ref(x: jax.Array) -> jax.Array:
    return x * jnp.clip(x + 3.0, 0.0, 6.0) / 6.0


if __name__ == "__main__":
    key = jax.random.PRNGKey(0)
    k1, k2, k3 = jax.random.split(key, 3)

    # 1) NCHW input matching the PyTorch module's convention (tiny -> fused jnp path).
    x1 = jax.random.normal(k1, (2, 4, 16, 16), dtype=jnp.float32) * 4.0
    y1 = jax.block_until_ready(h_swish(x1))
    assert y1.shape == x1.shape and y1.dtype == x1.dtype
    assert jnp.allclose(y1, h_swish_ref(x1), atol=1e-5, rtol=1e-5), "mismatch (tiny)"

    # 2) Large enough to take the Pallas path (lane-dense W=4096, 2 parallel blocks).
    x2 = jax.random.normal(k2, (2, 16, 32, 128), dtype=jnp.float32) * 4.0
    y2 = jax.block_until_ready(h_swish(x2))
    assert y2.shape == x2.shape and y2.dtype == x2.dtype
    assert jnp.allclose(y2, h_swish_ref(x2), atol=1e-5, rtol=1e-5), "mismatch (pallas)"

    # 3) Ragged element count; force the Pallas path to exercise prefix+tail split.
    x3 = jax.random.normal(k3, (3, 5, 7, 11), dtype=jnp.float32) * 4.0
    y3 = jax.block_until_ready(h_swish(x3, min_pallas_bytes=0))
    assert y3.shape == x3.shape and y3.dtype == x3.dtype
    assert jnp.allclose(y3, h_swish_ref(x3), atol=1e-5, rtol=1e-5), "mismatch (ragged)"

    print("KERNEL_OK")
</pallas_src>

<mosaic_0001>
module attributes {stable_mosaic.version = 11 : i64} {
  func.func @_h_swish_kernel(%arg0: i32, %arg1: memref<16x4096xf32, #tpu.memory_space<vmem>>, %arg2: memref<16x4096xf32, #tpu.memory_space<vmem>>) attributes {dimension_semantics = [#tpu.dimension_semantics<parallel>], iteration_bounds = array<i64: 2>, scalar_prefetch = 0 : i64, scratch_operands = 0 : i64, tpu.core_type = #tpu.core_type<tc>, window_params = [{transform_indices = @transform_0, window_bounds = array<i64: 16, 4096>}, {transform_indices = @transform_1, window_bounds = array<i64: 16, 4096>}]} {
    %c0 = arith.constant 0 : index
    %c0_0 = arith.constant 0 : index
    %0 = vector.load %arg1[%c0, %c0_0] : memref<16x4096xf32, #tpu.memory_space<vmem>>, vector<16x4096xf32>
    %cst = arith.constant 3.000000e+00 : f32
    %1 = vector.broadcast %cst : f32 to vector<16x4096xf32>
    %2 = arith.addf %0, %1 : vector<16x4096xf32>
    %cst_1 = arith.constant 0.000000e+00 : f32
    %cst_2 = arith.constant 6.000000e+00 : f32
    %3 = vector.broadcast %cst_1 : f32 to vector<16x4096xf32>
    %4 = arith.maximumf %3, %2 : vector<16x4096xf32>
    %5 = vector.broadcast %cst_2 : f32 to vector<16x4096xf32>
    %6 = arith.minimumf %5, %4 : vector<16x4096xf32>
    %cst_3 = arith.constant 0.166666672 : f32
    %7 = vector.broadcast %cst_3 : f32 to vector<16x4096xf32>
    %8 = arith.mulf %6, %7 : vector<16x4096xf32>
    %9 = arith.mulf %0, %8 : vector<16x4096xf32>
    %c0_4 = arith.constant 0 : index
    %c0_5 = arith.constant 0 : index
    %10 = vector.load %arg2[%c0_4, %c0_5] : memref<16x4096xf32, #tpu.memory_space<vmem>>, vector<16x4096xf32>
    tpu.vector_store %arg2[%c0_4, %c0_5], %9 {strides = array<i32>} : memref<16x4096xf32, #tpu.memory_space<vmem>>, vector<16x4096xf32>,
    return
  }
  func.func @transform_0(%arg0: i32) -> (i32, i32) {
    %c0_i32 = arith.constant 0 : i32
    %c0_i32_0 = arith.constant 0 : i32
    return %arg0, %c0_i32 : i32, i32
  }
  func.func @transform_1(%arg0: i32) -> (i32, i32) {
    %c0_i32 = arith.constant 0 : i32
    %c0_i32_0 = arith.constant 0 : i32
    return %arg0, %c0_i32 : i32, i32
  }
}

</mosaic_0001>

<bundles_post_ra>
// kernel: tpu_custom_call.1
= control target key start
LH: loop header
LB: loop body
LE: loop exit
PB: predicated region body
PF: predicated region fallthrough
CT: control target
= control target key end

     0   :  { %6 = vsyncpa [#allocation3], 0  ;;  %s1285_s0 = inlined_call_operand.hbm [shape: f32[32,4096], index: 0, kind: input, shape index: {}]   ;;  %s1286_s1 = inlined_call_operand.hbm [shape: f32[32,4096], index: 1, kind: output, shape index: {}]  }
   0x1   :  { %8 = vsyncpa [#allocation3 + $0x1], 0 }
   0x2   :  { %9 = vsyncpa [#allocation4], 0 }
   0x3   :  { %11 = vsyncpa [#allocation4 + $0x1], 0  ;;  %s858_s6 = smov 0   ;;  %s860_s7 = smov 0  }
   0x4   :  { %s862_s8 = smov 0   ;;  %s864_s9 = smov 0  }
   0x5 LB: > { %s879_s10 = sadd.s32 4294967295, %s840_s9   ;;  %s674_s11 = sadd.s32 4294967294, %s840_s9   ;;  %s840_s9 = sphi %s864_s9, %s1299_s9   ;;  %s836_s8 = sphi %s862_s8, %s1298_s8   ;;  %s832_s7 = sphi %s860_s7, %s1297_s7   ;;  %s828_s6 = sphi %s858_s6, %s1296_s6  }
   0x6   : > { %s883_s12 = sadd.s32 1, %s840_s9   ;;  %s24_s13 = sadd.s32 1, %s836_s8 }
   0x7   : > { %s21_s14 = ssub.s32 %s840_s9, %s883_s12  ;;  %p31_p0 = scmp.ne.s32.totalorder %s836_s8, %s832_s7 }
   0x8   : > { %p22_p1 = scmp.eq.s32.totalorder %s21_s14, 0  ;;  %p32_p2 = scmp.eq.s32.totalorder %s840_s9, 0 }
   0x9   : > { %p37_p3 = scmp.ne.s32.totalorder %s832_s7, %s828_s6  ;;  %p38_p4 = scmp.eq.s32.totalorder %s879_s10, 0 }
   0xa   : > { %s895_s15 = scalar_select %p22_p1, %s836_s8, %s24_s13  }
   0xb   : > { %p897_p5 = por %p32_p2, %p31_p0  ;;  %p901_p6 = por %p38_p4, %p37_p3 }
   0xc   : > { %p61_p7 = scmp.eq.s32.totalorder %s879_s10, 1  ;;  %p67_p8 = scmp.eq.s32.totalorder %s674_s11, 1 }
   0xd   : > { %p706_p10 = scmp.lt.s32.totalorder %s840_s9, 2  ;;  %s87_s20 = sand.u32 1, %s836_s8  }
   0xe   : > { %p908_p11 = por %p61_p7, %p31_p0  ;;  %p912_p12 = por %p67_p8, %p37_p3 }
   0xf   : > { %s691_s21 = sshll.u32 %s840_s9, 13  ;;  %s677_s22 = sshll.u32 %s87_s20, 9 }
  0x10   : > { %s1290_s18 = scalar_select %p908_p11, 1, 0 }
  0x11   : > { %s1291_s19 = scalar_select %p912_p12, 1, 0 }
  0x12   : > { %s921_s25 = scalar_lea.hbm %s1285_s0, %s691_s21  ;;  %s91_s26 = scalar_lea.vmem [#allocation2], %s677_s22 }
  0x13   : > { %s99_s27 = sshll.u32 %s91_s26, 4  ;;  %p925_p13 = pnand %p706_p10, %p897_p5  ;;  %s929_s27 = int_to_ptr.vmem [resolvable:$true] %s99_s27 }
  0x14   : > { %s931_s29 = scalar_lea.sflag [#allocation3], %s87_s20  ;;  %s744_s30 = scalar_lea.hbm %s921_s25, 8192 }
  0x15   : > { %p745_p0 = scmp.ne.s32.totalorder %s921_s25, %s744_s30  ;;  %p746_p1 = pneg %p925_p13 }
  0x16   : > { %s749_s4 = scalar_lea.hbm %s1285_s0, 16384  ;;  %p750_p4 = scmp.lt.u32.totalorder %s921_s25, %s1285_s0 }
  0x17   : > { %p747_p2 = pnand %p746_p1, %p745_p0  ;;  %p751_p5 = scmp.lt.u32.totalorder %s749_s4, %s744_s30 }
  0x18   : > { %p753_p8 = scmp.lt.u32.totalorder %s744_s30, %s921_s25 }
  0x19   : > { %p748_p3 = pneg %p747_p2  ;;  %p752_p7 = por %p751_p5, %p750_p4 }
  0x1b   : > { %p754_p10 = por %p753_p8, %p752_p7 }
  0x1d   : > { %p755_p9 = pnand %p754_p10, %p748_p3 }
  0x1f   : > { %758 = shalt.err (!%p755_p9)
}
  0x20   : > { %s759_s13 = scalar_lea.vmem %s929_s27, 8192  ;;  %s842_s14 = smov [#allocation2]  }
  0x21   : > { %p760_p0 = scmp.ne.s32.totalorder %s929_s27, %s759_s13  ;;  %s764_s16 = sshll.u32 %s842_s14, 4  ;;  %s765_s16 = int_to_ptr.vmem [resolvable:$false] %s764_s16 }
  0x22   : > { %s766_s20 = scalar_lea.vmem %s765_s16, 16384  ;;  %p767_p11 = scmp.lt.s32.totalorder %s929_s27, %s765_s16 }
  0x23   : > { %p762_p2 = pnand %p760_p0, %p746_p1  ;;  %p768_p4 = scmp.lt.s32.totalorder %s766_s20, %s759_s13 }
  0x25   : > { %p763_p12 = pneg %p762_p2  ;;  %p769_p5 = por %p768_p4, %p767_p11 }
  0x27   : > { %p770_p7 = pnand %p769_p5, %p763_p12 }
  0x29   : > { %773 = shalt.err (!%p770_p7)
}
  0x2a   : > { %s843_s21 = smov 4096   ;;  %s844_s22 = smov 256  }
  0x2b   : > { %701 = dma.hbm_to_vmem [thread:$0]  (!%p925_p13), %s921_s25, 8192, %s929_s27, %s931_s29, %s843_s21, %s843_s21, %s844_s22  }
  0x2c   : > { %p681_p9 = scmp.ge.s32.totalorder %s840_s9, 1  ;;  %p107_p1 = scmp.lt.s32.totalorder %s840_s9, 3 }
  0x2e   : > { %p108_p3 = pnand %p681_p9, %p107_p1 }
  0x2f   : > { %s962_s23 = sand.u32 (!%p108_p3), 1, %s832_s7  }
  0x30   : > { %111 = sbr.rel (%p108_p3) target bundleno = 161 (0xa1), region = 24  ;;  %s682_s24 = sshll.u32 (!%p108_p3), %s962_s23, 9 }
  0x31   : > { %s114_s26 = scalar_lea.sflag (!%p108_p3), [#allocation3], %s962_s23  ;;  %s968_s30 = scalar_lea.vmem (!%p108_p3), [#allocation2], %s682_s24 }
  0x37   : > { %819 = dma.done.wait (%p901_p6), %s114_s26, 8192  }
  0x38   : > { %821 = vsyncadd (%p901_p6), %s114_s26, 4294959104  ;;  %v138_v0 = vld [vmem:[%s968_s30] sm:$0xff]  ;;  %v139_v1 = vld [vmem:[%s968_s30 + $0x8] sm:$0xff]  ;;  %s996_s17 = scalar_lea.vmem [#allocation5], %s682_s24  ;;  %s693_s25 = sshll.u32 %s879_s10, 13 }
  0x39   : > { %v140_v2 = vld [vmem:[%s968_s30 + $0x10] sm:$0xff]  ;;  %v202_v3 = vadd.f32 3.0, %v138_v0  ;;  %v203_v4 = vadd.f32 3.0, %v139_v1  ;;  %v141_v6 = vld [vmem:[%s968_s30 + $0x18] sm:$0xff]  ;;  %v142_v7 = vld [vmem:[%s968_s30 + $0x20] sm:$0xff]  ;;  %s601_s27 = sshll.u32 %s996_s17, 4  ;;  %s1237_s2 = scalar_lea.hbm %s1286_s1, %s693_s25  ;;  %s1239_s27 = int_to_ptr.vmem [resolvable:$true] %s601_s27 }
  0x3a   : > { %v204_v5 = vadd.f32 3.0, %v140_v2  ;;  %v143_v8 = vld [vmem:[%s968_s30 + $0x28] sm:$0xff]  ;;  %v205_v9 = vadd.f32 3.0, %v141_v6  ;;  %v206_v10 = vadd.f32 3.0, %v142_v7  ;;  %v144_v12 = vld [vmem:[%s968_s30 + $0x30] sm:$0xff]  ;;  %v145_v13 = vld [vmem:[%s968_s30 + $0x38] sm:$0xff] }
  0x3b   : > { %v207_v11 = vadd.f32 3.0, %v143_v8  ;;  %v266_v14 = vmax.f32 %v202_v3, 0.0  ;;  %v267_v15 = vmax.f32 %v203_v4, 0.0  ;;  %v208_v17 = vadd.f32 3.0, %v144_v12  ;;  %v983_v30 = vld [vmem:[%s968_s30 + $0x40] sm:$0xff]  ;;  %v986_v31 = vld [vmem:[%s968_s30 + $0x48] sm:$0xff] }
  0x3c   : > { %v268_v16 = vmax.f32 %v204_v5, 0.0  ;;  %v269_v18 = vmax.f32 %v205_v9, 0.0  ;;  %v270_v19 = vmax.f32 %v206_v10, 0.0  ;;  %v209_v21 = vadd.f32 3.0, %v145_v13  ;;  %v989_v32 = vld [vmem:[%s968_s30 + $0x50] sm:$0xff]  ;;  %v149_v43 = vld [vmem:[%s968_s30 + $0x58] sm:$0xff] }
  0x3d   : > { %v271_v20 = vmax.f32 %v207_v11, 0.0  ;;  %v330_v22 = vmin.f32 %v266_v14, 6.0  ;;  %v331_v23 = vmin.f32 %v267_v15, 6.0  ;;  %v272_v25 = vmax.f32 %v208_v17, 0.0  ;;  %v150_v44 = vld [vmem:[%s968_s30 + $0x60] sm:$0xff]  ;;  %v151_v45 = vld [vmem:[%s968_s30 + $0x68] sm:$0xff] }
  0x3e   : > { %v332_v24 = vmin.f32 %v268_v16, 6.0  ;;  %v333_v26 = vmin.f32 %v269_v18, 6.0  ;;  %v334_v27 = vmin.f32 %v270_v19, 6.0  ;;  %v273_v29 = vmax.f32 %v209_v21, 0.0  ;;  %v152_v58 = vld [vmem:[%s968_s30 + $0x70] sm:$0xff]  ;;  %v1009_v63 = vld [vmem:[%s968_s30 + $0x78] sm:$0xff] }
  0x3f   : > { %v335_v28 = vmin.f32 %v271_v20, 6.0  ;;  %v394_v33 = vmul.f32 0.16666667, %v330_v22  ;;  %v395_v34 = vmul.f32 0.16666667, %v331_v23  ;;  %v336_v42 = vmin.f32 %v272_v25, 6.0 }
  0x40   : > { %v396_v35 = vmul.f32 0.16666667, %v332_v24  ;;  %v397_v36 = vmul.f32 0.16666667, %v333_v26  ;;  %v398_v37 = vmul.f32 0.16666667, %v334_v27 }
  0x41   : > { %v399_v38 = vmul.f32 0.16666667, %v335_v28  ;;  %v458_v39 = vmul.f32 %v394_v33, %v138_v0  ;;  %v459_v40 = vmul.f32 %v395_v34, %v139_v1  ;;  %v337_v49 = vmin.f32 %v273_v29, 6.0  ;;  %v1021_v14 = vld [vmem:[%s968_s30 + $0x90] sm:$0xff]  ;;  %v157_v25 = vld [vmem:[%s968_s30 + $0x98] sm:$0xff]  ;;  %v158_v26 = vld [vmem:[%s968_s30 + $0xa0] sm:$0xff] }
  0x42   : > { %v460_v41 = vmul.f32 %v396_v35, %v140_v2  ;;  %v461_v46 = vmul.f32 %v397_v36, %v141_v6  ;;  %v462_v47 = vmul.f32 %v398_v37, %v142_v7  ;;  %v400_v50 = vmul.f32 0.16666667, %v336_v42  ;;  %v159_v27 = vld [vmem:[%s968_s30 + $0xa8] sm:$0xff]  ;;  %s587_s3 = scalar_lea.sflag [#allocation4], %s962_s23  ;;  %s774_s4 = scalar_lea.vmem %s1239_s27, 8192 }
  0x43   : > { %v463_v48 = vmul.f32 %v399_v38, %v143_v8  ;;  %522 = vst [vmem:[%s996_s17] sm:$0xff] %v458_v39  ;;  %523 = vst [vmem:[%s996_s17 + $0x8] sm:$0xff] %v459_v40  ;;  %v210_v51 = vadd.f32 3.0, %v983_v30  ;;  %v211_v52 = vadd.f32 3.0, %v986_v31  ;;  %v212_v53 = vadd.f32 3.0, %v989_v32  ;;  %p775_p6 = scmp.ne.s32.totalorder %s1239_s27, %s774_s4  ;;  %p1293_p11 = scmp.ne.s32.totalorder %s1290_s18, 0 }
  0x44   : > { %524 = vst [vmem:[%s996_s17 + $0x10] sm:$0xff] %v460_v41  ;;  %525 = vst [vmem:[%s996_s17 + $0x18] sm:$0xff] %v461_v46  ;;  %v401_v54 = vmul.f32 0.16666667, %v337_v49  ;;  %v213_v55 = vadd.f32 3.0, %v149_v43  ;;  %v214_v56 = vadd.f32 3.0, %v150_v44  ;;  %v464_v59 = vmul.f32 %v400_v50, %v144_v12 }
  0x45   : > { %526 = vst [vmem:[%s996_s17 + $0x20] sm:$0xff] %v462_v47  ;;  %527 = vst [vmem:[%s996_s17 + $0x28] sm:$0xff] %v463_v48  ;;  %v215_v57 = vadd.f32 3.0, %v151_v45  ;;  %v274_v60 = vmax.f32 %v210_v51, 0.0  ;;  %v275_v61 = vmax.f32 %v211_v52, 0.0  ;;  %v276_v62 = vmax.f32 %v212_v53, 0.0  ;;  %p776_p12 = pnand %p775_p6, %p1293_p11 }
  0x46   : > { %v465_v0 = vmul.f32 %v401_v54, %v145_v13  ;;  %v277_v1 = vmax.f32 %v213_v55, 0.0  ;;  %v278_v2 = vmax.f32 %v214_v56, 0.0  ;;  %528 = vst [vmem:[%s996_s17 + $0x30] sm:$0xff] %v464_v59  ;;  %v216_v7 = vadd.f32 3.0, %v152_v58  ;;  %v1015_v12 = vld [vmem:[%s968_s30 + $0x80] sm:$0xff]  ;;  %v1018_v13 = vld [vmem:[%s968_s30 + $0x88] sm:$0xff] }
  0x47   : > { %v279_v3 = vmax.f32 %v215_v57, 0.0  ;;  %v338_v4 = vmin.f32 %v274_v60, 6.0  ;;  %v339_v5 = vmin.f32 %v275_v61, 6.0  ;;  %v340_v6 = vmin.f32 %v276_v62, 6.0  ;;  %v1039_v52 = vld [vmem:[%s968_s30 + $0xb0] sm:$0xff]  ;;  %v1042_v53 = vld [vmem:[%s968_s30 + $0xb8] sm:$0xff]  ;;  %p777_p13 = pneg %p776_p12 }
  0x48   : > { %529 = vst [vmem:[%s996_s17 + $0x38] sm:$0xff] %v465_v0  ;;  %v341_v8 = vmin.f32 %v277_v1, 6.0  ;;  %v342_v9 = vmin.f32 %v278_v2, 6.0  ;;  %v217_v11 = vadd.f32 3.0, %v1009_v63  ;;  %v280_v24 = vmax.f32 %v216_v7, 0.0  ;;  %v1046_v59 = vld [vmem:[%s968_s30 + $0xc0] sm:$0xff] }
  0x49   : > { %v343_v10 = vmin.f32 %v279_v3, 6.0  ;;  %v402_v15 = vmul.f32 0.16666667, %v338_v4  ;;  %v403_v16 = vmul.f32 0.16666667, %v339_v5  ;;  %v221_v37 = vadd.f32 3.0, %v157_v25 }
  0x4a   : > { %v404_v17 = vmul.f32 0.16666667, %v340_v6  ;;  %v405_v18 = vmul.f32 0.16666667, %v341_v8  ;;  %v406_v19 = vmul.f32 0.16666667, %v342_v9 }
  0x4b   : > { %v407_v20 = vmul.f32 0.16666667, %v343_v10  ;;  %v466_v21 = vmul.f32 %v402_v15, %v983_v30  ;;  %v467_v22 = vmul.f32 %v403_v16, %v986_v31  ;;  %v281_v34 = vmax.f32 %v217_v11, 0.0  ;;  %v1049_v60 = vld [vmem:[%s968_s30 + $0xc8] sm:$0xff]  ;;  %v165_v7 = vld [vmem:[%s968_s30 + $0xd8] sm:$0xff]  ;;  %v166_v8 = vld [vmem:[%s968_s30 + $0xe0] sm:$0xff] }
  0x4c   : > { %v468_v23 = vmul.f32 %v404_v17, %v989_v32  ;;  %v469_v28 = vmul.f32 %v405_v18, %v149_v43  ;;  %v470_v29 = vmul.f32 %v406_v19, %v150_v44  ;;  %v344_v35 = vmin.f32 %v280_v24, 6.0  ;;  %v167_v9 = vld [vmem:[%s968_s30 + $0xe8] sm:$0xff]  ;;  %s845_s10 = smov [#allocation5]  }
  0x4d   : > { %v471_v33 = vmul.f32 %v407_v20, %v151_v45  ;;  %530 = vst [vmem:[%s996_s17 + $0x40] sm:$0xff] %v466_v21  ;;  %531 = vst [vmem:[%s996_s17 + $0x48] sm:$0xff] %v467_v22  ;;  %v218_v30 = vadd.f32 3.0, %v1015_v12  ;;  %v219_v31 = vadd.f32 3.0, %v1018_v13  ;;  %v220_v32 = vadd.f32 3.0, %v1021_v14  ;;  %s778_s5 = sshll.u32 %s845_s10, 4  ;;  %s779_s5 = int_to_ptr.vmem [resolvable:$false] %s778_s5 }
  0x4e   : > { %532 = vst [vmem:[%s996_s17 + $0x50] sm:$0xff] %v468_v23  ;;  %533 = vst [vmem:[%s996_s17 + $0x58] sm:$0xff] %v469_v28  ;;  %v345_v36 = vmin.f32 %v281_v34, 6.0  ;;  %v222_v38 = vadd.f32 3.0, %v158_v26  ;;  %v223_v39 = vadd.f32 3.0, %v159_v27  ;;  %v285_v45 = vmax.f32 %v221_v37, 0.0  ;;  %p781_p8 = scmp.lt.s32.totalorder %s1239_s27, %s779_s5 }
  0x4f   : > { %534 = vst [vmem:[%s996_s17 + $0x60] sm:$0xff] %v470_v29  ;;  %535 = vst [vmem:[%s996_s17 + $0x68] sm:$0xff] %v471_v33  ;;  %v408_v40 = vmul.f32 0.16666667, %v344_v35  ;;  %v282_v41 = vmax.f32 %v218_v30, 0.0  ;;  %v283_v42 = vmax.f32 %v219_v31, 0.0 }
  0x50   : > { %v284_v43 = vmax.f32 %v220_v32, 0.0  ;;  %v409_v44 = vmul.f32 0.16666667, %v345_v36  ;;  %v286_v46 = vmax.f32 %v222_v38, 0.0  ;;  %v287_v47 = vmax.f32 %v223_v39, 0.0  ;;  %v1074_v33 = vld [vmem:[%s968_s30 + $0xf0] sm:$0xff] }
  0x51   : > { %v472_v48 = vmul.f32 %v408_v40, %v152_v58  ;;  %v346_v49 = vmin.f32 %v282_v41, 6.0  ;;  %v347_v50 = vmin.f32 %v283_v42, 6.0  ;;  %v349_v55 = vmin.f32 %v285_v45, 6.0  ;;  %v1052_v58 = vld [vmem:[%s968_s30 + $0xd0] sm:$0xff]  ;;  %v1077_v32 = vld [vmem:[%s968_s30 + $0xf8] sm:$0xff]  ;;  %v1080_v40 = vld [vmem:[%s968_s30 + $0x100] sm:$0xff] }
  0x52   : > { %v348_v51 = vmin.f32 %v284_v43, 6.0  ;;  %v473_v54 = vmul.f32 %v409_v44, %v1009_v63  ;;  %v350_v56 = vmin.f32 %v286_v46, 6.0  ;;  %v351_v57 = vmin.f32 %v287_v47, 6.0  ;;  %v1083_v41 = vld [vmem:[%s968_s30 + $0x108] sm:$0xff]  ;;  %v1086_v42 = vld [vmem:[%s968_s30 + $0x110] sm:$0xff]  ;;  %s780_s11 = scalar_lea.vmem %s779_s5, 16384 }
  0x53   : > { %536 = vst [vmem:[%s996_s17 + $0x70] sm:$0xff] %v472_v48  ;;  %v410_v61 = vmul.f32 0.16666667, %v346_v49  ;;  %v411_v62 = vmul.f32 0.16666667, %v347_v50  ;;  %v224_v6 = vadd.f32 3.0, %v1039_v52  ;;  %p782_p10 = scmp.lt.s32.totalorder %s780_s11, %s774_s4 }
  0x54   : > { %v412_v0 = vmul.f32 0.16666667, %v348_v51  ;;  %537 = vst [vmem:[%s996_s17 + $0x78] sm:$0xff] %v473_v54  ;;  %v413_v63 = vmul.f32 0.16666667, %v349_v55  ;;  %v225_v16 = vadd.f32 3.0, %v1042_v53 }
  0x55   : > { %v414_v1 = vmul.f32 0.16666667, %v350_v56  ;;  %v415_v2 = vmul.f32 0.16666667, %v351_v57  ;;  %v474_v3 = vmul.f32 %v410_v61, %v1015_v12  ;;  %v475_v4 = vmul.f32 %v411_v62, %v1018_v13  ;;  %v173_v56 = vld [vmem:[%s968_s30 + $0x118] sm:$0xff]  ;;  %v174_v57 = vld [vmem:[%s968_s30 + $0x120] sm:$0xff]  ;;  %p783_p0 = por %p782_p10, %p781_p8 }
  0x56   : > { %v476_v5 = vmul.f32 %v412_v0, %v1021_v14  ;;  %v477_v10 = vmul.f32 %v413_v63, %v157_v25  ;;  %v288_v12 = vmax.f32 %v224_v6, 0.0  ;;  %v226_v13 = vadd.f32 3.0, %v1046_v59 }
  0x57   : > { %v478_v11 = vmul.f32 %v414_v1, %v158_v26  ;;  %v479_v15 = vmul.f32 %v415_v2, %v159_v27  ;;  %538 = vst [vmem:[%s996_s17 + $0x80] sm:$0xff] %v474_v3  ;;  %539 = vst [vmem:[%s996_s17 + $0x88] sm:$0xff] %v475_v4  ;;  %v227_v14 = vadd.f32 3.0, %v1049_v60  ;;  %v228_v17 = vadd.f32 3.0, %v1052_v58  ;;  %p784_p2 = pnand %p783_p0, %p777_p13 }
  0x58   : > { %540 = vst [vmem:[%s996_s17 + $0x90] sm:$0xff] %v476_v5  ;;  %541 = vst [vmem:[%s996_s17 + $0x98] sm:$0xff] %v477_v10  ;;  %v289_v18 = vmax.f32 %v225_v16, 0.0  ;;  %v229_v19 = vadd.f32 3.0, %v165_v7  ;;  %v230_v20 = vadd.f32 3.0, %v166_v8  ;;  %v231_v21 = vadd.f32 3.0, %v167_v9 }
  0x59   : > { %542 = vst [vmem:[%s996_s17 + $0xa0] sm:$0xff] %v478_v11  ;;  %543 = vst [vmem:[%s996_s17 + $0xa8] sm:$0xff] %v479_v15  ;;  %v352_v22 = vmin.f32 %v288_v12, 6.0  ;;  %v290_v23 = vmax.f32 %v226_v13, 0.0  ;;  %v291_v24 = vmax.f32 %v227_v14, 0.0  ;;  %v292_v25 = vmax.f32 %v228_v17, 0.0 }
  0x5a   : > { %v353_v26 = vmin.f32 %v289_v18, 6.0  ;;  %v293_v27 = vmax.f32 %v229_v19, 0.0  ;;  %v294_v28 = vmax.f32 %v230_v20, 0.0  ;;  %v295_v29 = vmax.f32 %v231_v21, 0.0  ;;  %v1110_v12 = vld [vmem:[%s968_s30 + $0x130] sm:$0xff]  ;;  %v1113_v19 = vld [vmem:[%s968_s30 + $0x138] sm:$0xff] }
  0x5b   : > { %v416_v34 = vmul.f32 0.16666667, %v352_v22  ;;  %v354_v35 = vmin.f32 %v290_v23, 6.0  ;;  %v355_v30 = vmin.f32 %v291_v24, 6.0  ;;  %v356_v31 = vmin.f32 %v292_v25, 6.0  ;;  %v1116_v24 = vld [vmem:[%s968_s30 + $0x140] sm:$0xff] }
  0x5c   : > { %v417_v36 = vmul.f32 0.16666667, %v353_v26  ;;  %v357_v37 = vmin.f32 %v293_v27, 6.0  ;;  %v358_v38 = vmin.f32 %v294_v28, 6.0  ;;  %v359_v39 = vmin.f32 %v295_v29, 6.0  ;;  %v1119_v25 = vld [vmem:[%s968_s30 + $0x148] sm:$0xff] }
  0x5d   : > { %v480_v43 = vmul.f32 %v416_v34, %v1039_v52  ;;  %v418_v44 = vmul.f32 0.16666667, %v354_v35  ;;  %v419_v45 = vmul.f32 0.16666667, %v355_v30  ;;  %v420_v46 = vmul.f32 0.16666667, %v356_v31 }
  0x5e   : > { %v481_v47 = vmul.f32 %v417_v36, %v1042_v53  ;;  %v421_v48 = vmul.f32 0.16666667, %v357_v37  ;;  %v422_v49 = vmul.f32 0.16666667, %v358_v38  ;;  %v423_v50 = vmul.f32 0.16666667, %v359_v39 }
  0x5f   : > { %544 = vst [vmem:[%s996_s17 + $0xb0] sm:$0xff] %v480_v43  ;;  %v482_v51 = vmul.f32 %v418_v44, %v1046_v59  ;;  %v483_v54 = vmul.f32 %v419_v45, %v1049_v60  ;;  %v484_v55 = vmul.f32 %v420_v46, %v1052_v58  ;;  %v232_v52 = vadd.f32 3.0, %v1074_v33  ;;  %v175_v53 = vld [vmem:[%s968_s30 + $0x128] sm:$0xff]  ;;  %v1122_v26 = vld [vmem:[%s968_s30 + $0x150] sm:$0xff]  ;;  %v181_v43 = vld [vmem:[%s968_s30 + $0x158] sm:$0xff] }
  0x60   : > { %545 = vst [vmem:[%s996_s17 + $0xb8] sm:$0xff] %v481_v47  ;;  %v485_v61 = vmul.f32 %v421_v48, %v165_v7  ;;  %v486_v62 = vmul.f32 %v422_v49, %v166_v8  ;;  %v487_v0 = vmul.f32 %v423_v50, %v167_v9  ;;  %v233_v63 = vadd.f32 3.0, %v1077_v32  ;;  %v182_v44 = vld [vmem:[%s968_s30 + $0x160] sm:$0xff] }
  0x61   : > { %546 = vst [vmem:[%s996_s17 + $0xc0] sm:$0xff] %v482_v51  ;;  %547 = vst [vmem:[%s996_s17 + $0xc8] sm:$0xff] %v483_v54  ;;  %v296_v59 = vmax.f32 %v232_v52, 0.0  ;;  %v234_v60 = vadd.f32 3.0, %v1080_v40  ;;  %v235_v58 = vadd.f32 3.0, %v1083_v41  ;;  %v236_v1 = vadd.f32 3.0, %v1086_v42 }
  0x62   : > { %548 = vst [vmem:[%s996_s17 + $0xd0] sm:$0xff] %v484_v55  ;;  %549 = vst [vmem:[%s996_s17 + $0xd8] sm:$0xff] %v485_v61  ;;  %v297_v2 = vmax.f32 %v233_v63, 0.0  ;;  %v237_v3 = vadd.f32 3.0, %v173_v56  ;;  %v238_v4 = vadd.f32 3.0, %v174_v57  ;;  %v239_v5 = vadd.f32 3.0, %v175_v53 }
  0x63   : > { %550 = vst [vmem:[%s996_s17 + $0xe0] sm:$0xff] %v486_v62  ;;  %551 = vst [vmem:[%s996_s17 + $0xe8] sm:$0xff] %v487_v0  ;;  %v360_v6 = vmin.f32 %v296_v59, 6.0  ;;  %v298_v7 = vmax.f32 %v234_v60, 0.0  ;;  %v299_v8 = vmax.f32 %v235_v58, 0.0  ;;  %v300_v9 = vmax.f32 %v236_v1, 0.0 }
  0x64   : > { %v361_v10 = vmin.f32 %v297_v2, 6.0  ;;  %v301_v11 = vmax.f32 %v237_v3, 0.0  ;;  %v302_v15 = vmax.f32 %v238_v4, 0.0  ;;  %v303_v16 = vmax.f32 %v239_v5, 0.0  ;;  %v1146_v59 = vld [vmem:[%s968_s30 + $0x170] sm:$0xff]  ;;  %v1149_v3 = vld [vmem:[%s968_s30 + $0x178] sm:$0xff] }
  0x65   : > { %v424_v13 = vmul.f32 0.16666667, %v360_v6  ;;  %v362_v14 = vmin.f32 %v298_v7, 6.0  ;;  %v363_v17 = vmin.f32 %v299_v8, 6.0  ;;  %v364_v18 = vmin.f32 %v300_v9, 6.0  ;;  %v1152_v8 = vld [vmem:[%s968_s30 + $0x180] sm:$0xff] }
  0x66   : > { %v425_v20 = vmul.f32 0.16666667, %v361_v10  ;;  %v365_v21 = vmin.f32 %v301_v11, 6.0  ;;  %v366_v22 = vmin.f32 %v302_v15, 6.0  ;;  %v367_v23 = vmin.f32 %v303_v16, 6.0  ;;  %v1155_v9 = vld [vmem:[%s968_s30 + $0x188] sm:$0xff] }
  0x67   : > { %v488_v27 = vmul.f32 %v424_v13, %v1074_v33  ;;  %v426_v28 = vmul.f32 0.16666667, %v362_v14  ;;  %v427_v29 = vmul.f32 0.16666667, %v363_v17  ;;  %v428_v34 = vmul.f32 0.16666667, %v364_v18 }
  0x68   : > { %v489_v35 = vmul.f32 %v425_v20, %v1077_v32  ;;  %v429_v30 = vmul.f32 0.16666667, %v365_v21  ;;  %v430_v31 = vmul.f32 0.16666667, %v366_v22  ;;  %v431_v36 = vmul.f32 0.16666667, %v367_v23 }
  0x69   : > { %552 = vst [vmem:[%s996_s17 + $0xf0] sm:$0xff] %v488_v27  ;;  %v490_v37 = vmul.f32 %v426_v28, %v1080_v40  ;;  %v491_v38 = vmul.f32 %v427_v29, %v1083_v41  ;;  %v492_v39 = vmul.f32 %v428_v34, %v1086_v42  ;;  %v240_v33 = vadd.f32 3.0, %v1110_v12  ;;  %v183_v32 = vld [vmem:[%s968_s30 + $0x168] sm:$0xff]  ;;  %v1158_v10 = vld [vmem:[%s968_s30 + $0x190] sm:$0xff]  ;;  %v189_v27 = vld [vmem:[%s968_s30 + $0x198] sm:$0xff] }
  0x6a   : > { %553 = vst [vmem:[%s996_s17 + $0xf8] sm:$0xff] %v489_v35  ;;  %v493_v45 = vmul.f32 %v429_v30, %v173_v56  ;;  %v494_v46 = vmul.f32 %v430_v31, %v174_v57  ;;  %v495_v47 = vmul.f32 %v431_v36, %v175_v53  ;;  %v241_v48 = vadd.f32 3.0, %v1113_v19  ;;  %v190_v28 = vld [vmem:[%s968_s30 + $0x1a0] sm:$0xff] }
  0x6b   : > { %554 = vst [vmem:[%s996_s17 + $0x100] sm:$0xff] %v490_v37  ;;  %555 = vst [vmem:[%s996_s17 + $0x108] sm:$0xff] %v491_v38  ;;  %v304_v40 = vmax.f32 %v240_v33, 0.0  ;;  %v242_v41 = vadd.f32 3.0, %v1116_v24  ;;  %v243_v42 = vadd.f32 3.0, %v1119_v25  ;;  %v244_v49 = vadd.f32 3.0, %v1122_v26 }
  0x6c   : > { %556 = vst [vmem:[%s996_s17 + $0x110] sm:$0xff] %v492_v39  ;;  %557 = vst [vmem:[%s996_s17 + $0x118] sm:$0xff] %v493_v45  ;;  %v305_v50 = vmax.f32 %v241_v48, 0.0  ;;  %v245_v51 = vadd.f32 3.0, %v181_v43  ;;  %v246_v54 = vadd.f32 3.0, %v182_v44  ;;  %v247_v55 = vadd.f32 3.0, %v183_v32 }
  0x6d   : > { %558 = vst [vmem:[%s996_s17 + $0x120] sm:$0xff] %v494_v46  ;;  %559 = vst [vmem:[%s996_s17 + $0x128] sm:$0xff] %v495_v47  ;;  %v368_v52 = vmin.f32 %v304_v40, 6.0  ;;  %v306_v56 = vmax.f32 %v242_v41, 0.0  ;;  %v307_v57 = vmax.f32 %v243_v42, 0.0  ;;  %v308_v53 = vmax.f32 %v244_v49, 0.0 }
  0x6e   : > { %v369_v61 = vmin.f32 %v305_v50, 6.0  ;;  %v309_v62 = vmax.f32 %v245_v51, 0.0  ;;  %v310_v0 = vmax.f32 %v246_v54, 0.0  ;;  %v311_v63 = vmax.f32 %v247_v55, 0.0  ;;  %v1182_v40 = vld [vmem:[%s968_s30 + $0x1b0] sm:$0xff]  ;;  %v1185_v51 = vld [vmem:[%s968_s30 + $0x1b8] sm:$0xff] }
  0x6f   : > { %v432_v60 = vmul.f32 0.16666667, %v368_v52  ;;  %v370_v58 = vmin.f32 %v306_v56, 6.0  ;;  %v371_v1 = vmin.f32 %v307_v57, 6.0  ;;  %v372_v2 = vmin.f32 %v308_v53, 6.0  ;;  %v1188_v57 = vld [vmem:[%s968_s30 + $0x1c0] sm:$0xff] }
  0x70   : > { %v433_v4 = vmul.f32 0.16666667, %v369_v61  ;;  %v373_v5 = vmin.f32 %v309_v62, 6.0  ;;  %v374_v6 = vmin.f32 %v310_v0, 6.0  ;;  %v375_v7 = vmin.f32 %v311_v63, 6.0  ;;  %v1191_v53 = vld [vmem:[%s968_s30 + $0x1c8] sm:$0xff] }
  0x71   : > { %v496_v11 = vmul.f32 %v432_v60, %v1110_v12  ;;  %v434_v15 = vmul.f32 0.16666667, %v370_v58  ;;  %v435_v16 = vmul.f32 0.16666667, %v371_v1  ;;  %v436_v13 = vmul.f32 0.16666667, %v372_v2 }
  0x72   : > { %v497_v14 = vmul.f32 %v433_v4, %v1113_v19  ;;  %v437_v17 = vmul.f32 0.16666667, %v373_v5  ;;  %v438_v18 = vmul.f32 0.16666667, %v374_v6  ;;  %v439_v20 = vmul.f32 0.16666667, %v375_v7 }
  0x73   : > { %560 = vst [vmem:[%s996_s17 + $0x130] sm:$0xff] %v496_v11  ;;  %v498_v21 = vmul.f32 %v434_v15, %v1116_v24  ;;  %v499_v22 = vmul.f32 %v435_v16, %v1119_v25  ;;  %v500_v23 = vmul.f32 %v436_v13, %v1122_v26  ;;  %v248_v12 = vadd.f32 3.0, %v1146_v59  ;;  %v191_v19 = vld [vmem:[%s968_s30 + $0x1a8] sm:$0xff]  ;;  %v1194_v61 = vld [vmem:[%s968_s30 + $0x1d0] sm:$0xff]  ;;  %v197_v11 = vld [vmem:[%s968_s30 + $0x1d8] sm:$0xff] }
  0x74   : > { %561 = vst [vmem:[%s996_s17 + $0x138] sm:$0xff] %v497_v14  ;;  %v501_v29 = vmul.f32 %v437_v17, %v181_v43  ;;  %v502_v34 = vmul.f32 %v438_v18, %v182_v44  ;;  %v503_v35 = vmul.f32 %v439_v20, %v183_v32  ;;  %v249_v30 = vadd.f32 3.0, %v1149_v3  ;;  %v198_v15 = vld [vmem:[%s968_s30 + $0x1e0] sm:$0xff] }
  0x75   : > { %562 = vst [vmem:[%s996_s17 + $0x140] sm:$0xff] %v498_v21  ;;  %563 = vst [vmem:[%s996_s17 + $0x148] sm:$0xff] %v499_v22  ;;  %v312_v24 = vmax.f32 %v248_v12, 0.0  ;;  %v250_v25 = vadd.f32 3.0, %v1152_v8  ;;  %v251_v26 = vadd.f32 3.0, %v1155_v9  ;;  %v252_v31 = vadd.f32 3.0, %v1158_v10 }
  0x76   : > { %564 = vst [vmem:[%s996_s17 + $0x150] sm:$0xff] %v500_v23  ;;  %565 = vst [vmem:[%s996_s17 + $0x158] sm:$0xff] %v501_v29  ;;  %v313_v36 = vmax.f32 %v249_v30, 0.0  ;;  %v253_v37 = vadd.f32 3.0, %v189_v27  ;;  %v254_v38 = vadd.f32 3.0, %v190_v28  ;;  %v255_v39 = vadd.f32 3.0, %v191_v19 }
  0x77   : > { %566 = vst [vmem:[%s996_s17 + $0x160] sm:$0xff] %v502_v34  ;;  %567 = vst [vmem:[%s996_s17 + $0x168] sm:$0xff] %v503_v35  ;;  %v376_v33 = vmin.f32 %v312_v24, 6.0  ;;  %v314_v43 = vmax.f32 %v250_v25, 0.0  ;;  %v315_v44 = vmax.f32 %v251_v26, 0.0  ;;  %v316_v32 = vmax.f32 %v252_v31, 0.0 }
  0x78   : > { %v377_v45 = vmin.f32 %v313_v36, 6.0  ;;  %v317_v46 = vmax.f32 %v253_v37, 0.0  ;;  %v318_v47 = vmax.f32 %v254_v38, 0.0  ;;  %v319_v48 = vmax.f32 %v255_v39, 0.0  ;;  %v200_v36 = vld [vmem:[%s968_s30 + $0x1f0] sm:$0xff] }
  0x79   : > { %v440_v41 = vmul.f32 0.16666667, %v376_v33  ;;  %v378_v42 = vmin.f32 %v314_v43, 6.0  ;;  %v379_v49 = vmin.f32 %v315_v44, 6.0  ;;  %v380_v50 = vmin.f32 %v316_v32, 6.0  ;;  %v201_v43 = vld [vmem:[%s968_s30 + $0x1f8] sm:$0xff] }
  0x7a   : > { %v441_v54 = vmul.f32 0.16666667, %v377_v45  ;;  %v381_v55 = vmin.f32 %v317_v46, 6.0  ;;  %v382_v52 = vmin.f32 %v318_v47, 6.0  ;;  %v383_v56 = vmin.f32 %v319_v48, 6.0 }
  0x7b   : > { %v504_v62 = vmul.f32 %v440_v41, %v1146_v59  ;;  %v442_v0 = vmul.f32 0.16666667, %v378_v42  ;;  %v443_v63 = vmul.f32 0.16666667, %v379_v49  ;;  %v444_v60 = vmul.f32 0.16666667, %v380_v50 }
  0x7c   : > { %v505_v58 = vmul.f32 %v441_v54, %v1149_v3  ;;  %v445_v1 = vmul.f32 0.16666667, %v381_v55  ;;  %v446_v2 = vmul.f32 0.16666667, %v382_v52  ;;  %v447_v4 = vmul.f32 0.16666667, %v383_v56 }
  0x7d   : > { %568 = vst [vmem:[%s996_s17 + $0x170] sm:$0xff] %v504_v62  ;;  %v506_v5 = vmul.f32 %v442_v0, %v1152_v8  ;;  %v507_v6 = vmul.f32 %v443_v63, %v1155_v9  ;;  %v508_v7 = vmul.f32 %v444_v60, %v1158_v10  ;;  %v256_v59 = vadd.f32 3.0, %v1182_v40  ;;  %v199_v3 = vld [vmem:[%s968_s30 + $0x1e8] sm:$0xff] }
  0x7e   : > { %569 = vst [vmem:[%s996_s17 + $0x178] sm:$0xff] %v505_v58  ;;  %v509_v16 = vmul.f32 %v445_v1, %v189_v27  ;;  %v510_v13 = vmul.f32 %v446_v2, %v190_v28  ;;  %v511_v14 = vmul.f32 %v447_v4, %v191_v19  ;;  %v257_v17 = vadd.f32 3.0, %v1185_v51 }
  0x7f   : > { %570 = vst [vmem:[%s996_s17 + $0x180] sm:$0xff] %v506_v5  ;;  %571 = vst [vmem:[%s996_s17 + $0x188] sm:$0xff] %v507_v6  ;;  %v320_v8 = vmax.f32 %v256_v59, 0.0  ;;  %v258_v9 = vadd.f32 3.0, %v1188_v57  ;;  %v259_v10 = vadd.f32 3.0, %v1191_v53  ;;  %v260_v18 = vadd.f32 3.0, %v1194_v61 }
  0x80   : > { %572 = vst [vmem:[%s996_s17 + $0x190] sm:$0xff] %v508_v7  ;;  %573 = vst [vmem:[%s996_s17 + $0x198] sm:$0xff] %v509_v16  ;;  %v321_v20 = vmax.f32 %v257_v17, 0.0  ;;  %v261_v21 = vadd.f32 3.0, %v197_v11  ;;  %v262_v22 = vadd.f32 3.0, %v198_v15  ;;  %v263_v23 = vadd.f32 3.0, %v199_v3 }
  0x81   : > { %574 = vst [vmem:[%s996_s17 + $0x1a0] sm:$0xff] %v510_v13  ;;  %575 = vst [vmem:[%s996_s17 + $0x1a8] sm:$0xff] %v511_v14  ;;  %v384_v12 = vmin.f32 %v320_v8, 6.0  ;;  %v322_v27 = vmax.f32 %v258_v9, 0.0  ;;  %v323_v28 = vmax.f32 %v259_v10, 0.0  ;;  %v324_v19 = vmax.f32 %v260_v18, 0.0 }
  0x82   : > { %v385_v29 = vmin.f32 %v321_v20, 6.0  ;;  %v325_v34 = vmax.f32 %v261_v21, 0.0  ;;  %v326_v35 = vmax.f32 %v262_v22, 0.0  ;;  %v327_v30 = vmax.f32 %v263_v23, 0.0 }
  0x83   : > { %v448_v24 = vmul.f32 0.16666667, %v384_v12  ;;  %v386_v25 = vmin.f32 %v322_v27, 6.0  ;;  %v387_v26 = vmin.f32 %v323_v28, 6.0  ;;  %v388_v31 = vmin.f32 %v324_v19, 6.0 }
  0x84   : > { %v449_v37 = vmul.f32 0.16666667, %v385_v29  ;;  %v389_v38 = vmin.f32 %v325_v34, 6.0  ;;  %v390_v39 = vmin.f32 %v326_v35, 6.0  ;;  %v391_v33 = vmin.f32 %v327_v30, 6.0 }
  0x85   : > { %v512_v44 = vmul.f32 %v448_v24, %v1182_v40  ;;  %v450_v32 = vmul.f32 0.16666667, %v386_v25  ;;  %v451_v45 = vmul.f32 0.16666667, %v387_v26  ;;  %v452_v46 = vmul.f32 0.16666667, %v388_v31 }
  0x86   : > { %v513_v47 = vmul.f32 %v449_v37, %v1185_v51  ;;  %v453_v48 = vmul.f32 0.16666667, %v389_v38  ;;  %v454_v41 = vmul.f32 0.16666667, %v390_v39  ;;  %v455_v42 = vmul.f32 0.16666667, %v391_v33 }
  0x87   : > { %576 = vst [vmem:[%s996_s17 + $0x1b0] sm:$0xff] %v512_v44  ;;  %v514_v49 = vmul.f32 %v450_v32, %v1188_v57  ;;  %v515_v50 = vmul.f32 %v451_v45, %v1191_v53  ;;  %v516_v40 = vmul.f32 %v452_v46, %v1194_v61  ;;  %v264_v54 = vadd.f32 3.0, %v200_v36 }
  0x88   : > { %577 = vst [vmem:[%s996_s17 + $0x1b8] sm:$0xff] %v513_v47  ;;  %v517_v55 = vmul.f32 %v453_v48, %v197_v11  ;;  %v518_v51 = vmul.f32 %v454_v41, %v198_v15  ;;  %v519_v52 = vmul.f32 %v455_v42, %v199_v3  ;;  %v265_v56 = vadd.f32 3.0, %v201_v43 }
  0x89   : > { %578 = vst [vmem:[%s996_s17 + $0x1c0] sm:$0xff] %v514_v49  ;;  %579 = vst [vmem:[%s996_s17 + $0x1c8] sm:$0xff] %v515_v50  ;;  %v328_v62 = vmax.f32 %v264_v54, 0.0 }
  0x8a   : > { %580 = vst [vmem:[%s996_s17 + $0x1d0] sm:$0xff] %v516_v40  ;;  %581 = vst [vmem:[%s996_s17 + $0x1d8] sm:$0xff] %v517_v55  ;;  %v329_v57 = vmax.f32 %v265_v56, 0.0 }
  0x8b   : > { %582 = vst [vmem:[%s996_s17 + $0x1e0] sm:$0xff] %v518_v51  ;;  %583 = vst [vmem:[%s996_s17 + $0x1e8] sm:$0xff] %v519_v52  ;;  %v392_v53 = vmin.f32 %v328_v62, 6.0 }
  0x8c   : > { %v393_v61 = vmin.f32 %v329_v57, 6.0 }
  0x8d   : > { %v456_v0 = vmul.f32 0.16666667, %v392_v53 }
  0x8e   : > { %v457_v63 = vmul.f32 0.16666667, %v393_v61 }
  0x8f   : > { %v520_v60 = vmul.f32 %v456_v0, %v200_v36 }
  0x90   : > { %v521_v58 = vmul.f32 %v457_v63, %v201_v43 }
  0x91   : > { %584 = vst [vmem:[%s996_s17 + $0x1f0] sm:$0xff] %v520_v60 }
  0x92   : > { %585 = vst [vmem:[%s996_s17 + $0x1f8] sm:$0xff] %v521_v58 }
  0x93   : > { %787 = shalt.err (!%p784_p2)
}
  0x94   : > { %s788_s13 = scalar_lea.hbm %s1237_s2, 8192  ;;  %s792_s20 = scalar_lea.hbm %s1286_s1, 16384 }
  0x95   : > { %p789_p4 = scmp.ne.s32.totalorder %s1237_s2, %s788_s13  ;;  %p793_p9 = scmp.lt.u32.totalorder %s1237_s2, %s1286_s1 }
  0x96   : > { %p794_p1 = scmp.lt.u32.totalorder %s792_s20, %s788_s13  ;;  %p796_p6 = scmp.lt.u32.totalorder %s788_s13, %s1237_s2 }
  0x97   : > { %p790_p5 = pnand %p789_p4, %p1293_p11 }
  0x98   : > { %p795_p3 = por %p794_p1, %p793_p9 }
  0x99   : > { %p791_p7 = pneg %p790_p5 }
  0x9a   : > { %p797_p12 = por %p796_p6, %p795_p3 }
  0x9c   : > { %p798_p13 = pnand %p797_p12, %p791_p7 }
  0x9e   : > { %801 = shalt.err (!%p798_p13)
}
  0x9f   : > { %s846_s24 = smov 4096   ;;  %s847_s26 = smov 256  }
  0xa0   : > { %696 = dma.vmem_to_hbm [thread:$0]  (%p1293_p11), %s1239_s27, 8192, %s1237_s2, %s587_s3, %s846_s24, %s846_s24, %s847_s26  }
  0xa1 PF: > { %s616_s30 = sand.u32 1, %s828_s6   ;;  %p1294_p8 = scmp.ne.s32.totalorder %s1291_s19, 0 }
  0xa2   : > { %p1295_p10 = scmp.ge.s32.totalorder %s840_s9, 2  ;;  %s617_s17 = scalar_lea.sflag [#allocation4], %s616_s30 }
  0xa4   : > { %p703_p0 = pnand %p1295_p10, %p1294_p8 }
  0xa6   : > { %823 = dma.done.wait (!%p703_p0), %s617_s17, 8192  }
  0xa7   : > { %825 = vsyncadd (!%p703_p0), %s617_s17, 4294959104  ;;  %p14_p2 = scmp.ge.s32.totalorder %s883_s12, 4   ;;  %s1296_s6 = smov %s832_s7 }
  0xa8   : > { %s1297_s7 = smov %s836_s8  ;;  %s1298_s8 = smov %s895_s15 }
  0xa9   : > { %s1299_s9 = smov %s883_s12  ;;  %16 = sbr.rel (!%p14_p2) target bundleno = 5 (0x5), region = 69 }
  0xb0   :  { %622 = vsyncpa [#allocation3], 1 }
  0xb1   :  { %624 = vsyncpa [#allocation3 + $0x1], 1 }
  0xb2   :  { %625 = vsyncpa [#allocation4], 1 }
  0xb3   :  { %627 = vsyncpa [#allocation4 + $0x1], 1 }

</bundles_post_ra>
